<compile_context>
chip_gen: v5e
topology: v5e:2x2
jax: 0.10.0
libtpu: 0.0.40
codegen_flags: <defaults>
</compile_context>

<pallas_src>
import jax
import jax.numpy as jnp
from jax.experimental import pallas as pl
from jax.experimental.pallas import tpu as pltpu

LANES = 128
SUBLANES = 8


def mlp_price_kernel(x_ref, w1_ref, b1_ref, w2_ref, b2_ref, o_ref):
    x = x_ref[...]                                                    # (TB, dim_in)
    h = jnp.dot(x, w1_ref[...], preferred_element_type=jnp.float32)   # MXU, f32 acc
    h = h + b1_ref[...]                                               # (1, hidden) bcast
    # F.leaky_relu default negative_slope = 0.01; max() is exact for slope < 1.
    h = jnp.maximum(h, 0.01 * h)
    y = jnp.dot(h, w2_ref[...], preferred_element_type=jnp.float32)   # (TB, dim_out_p)
    y = y + b2_ref[...]
    o_ref[...] = y.astype(o_ref.dtype)                                # lane-dense store


def mlp_price(x, w1, b1, w2, b2, *, block_b=1024, vmem_budget=24 << 20):
    """x: (B, dim_in); w1: (dim_in, hidden); b1: (1, hidden);
       w2: (hidden, dim_out); b2: (1, dim_out) -> (B, dim_out)"""
    B, dim_in = x.shape
    hidden = w1.shape[1]
    dim_out = w2.shape[1]
    itemsize = jnp.dtype(x.dtype).itemsize

    # ---- Lane-dense output: pad the second layer's output dim to a multiple of 128.
    dim_out_p = max(LANES, pl.cdiv(dim_out, LANES) * LANES)
    if dim_out_p != dim_out:
        w2p = jnp.pad(w2, ((0, 0), (0, dim_out_p - dim_out)))
        b2p = jnp.pad(b2, ((0, 0), (0, dim_out_p - dim_out)))
    else:
        w2p, b2p = w2, b2

    # ---- Batch tile: multiple of 8 sublanes, capped by block_b and a VMEM budget
    # (double-buffered x + output tiles plus the resident weights).
    resident = (dim_in * hidden + hidden + hidden * dim_out_p + dim_out_p) * itemsize
    per_row = 2 * (dim_in + dim_out_p) * itemsize  # 2x for double buffering
    tb_cap = max(SUBLANES, (max(vmem_budget - resident, per_row) // per_row))
    tb = min(block_b, int(tb_cap), pl.cdiv(B, SUBLANES) * SUBLANES)
    tb = max(SUBLANES, (tb // SUBLANES) * SUBLANES)
    Bp = pl.cdiv(B, tb) * tb
    xp = jnp.pad(x, ((0, Bp - B), (0, 0))) if Bp != B else x

    grid = (Bp // tb,)

    out_p = pl.pallas_call(
        mlp_price_kernel,
        out_shape=jax.ShapeDtypeStruct((Bp, dim_out_p), x.dtype),
        grid=grid,
        in_specs=[
            # Streamed: one batch tile per grid step.
            pl.BlockSpec((tb, dim_in), lambda i: (i, 0)),
            # Resident across the whole grid (constant block index -> single DMA).
            pl.BlockSpec((dim_in, hidden), lambda i: (0, 0)),
            pl.BlockSpec((1, hidden), lambda i: (0, 0)),
            pl.BlockSpec((hidden, dim_out_p), lambda i: (0, 0)),
            pl.BlockSpec((1, dim_out_p), lambda i: (0, 0)),
        ],
        out_specs=pl.BlockSpec((tb, dim_out_p), lambda i: (i, 0)),
        compiler_params=pltpu.CompilerParams(
            dimension_semantics=("parallel",),
        ),
    )(xp, w1, b1, w2p, b2p)

    # Drop batch padding and lane padding outside the kernel.
    return out_p[:B, :dim_out]


def init_params(key, dim_in, dim_out):
    """Deterministic init mirroring the PyTorch module:
       - weights: xavier_normal_
       - biases:  nn.Linear default uniform(-1/sqrt(fan_in), 1/sqrt(fan_in))"""
    hidden = dim_in // 2
    k1, k2, k3, k4 = jax.random.split(key, 4)

    def xavier_normal(k, fan_in, fan_out):
        std = (2.0 / (fan_in + fan_out)) ** 0.5
        # stored as (in, out) for the kernel's x @ W convention
        return std * jax.random.normal(k, (fan_in, fan_out), dtype=jnp.float32)

    def bias_uniform(k, fan_in, n):
        bound = 1.0 / (fan_in ** 0.5)
        return jax.random.uniform(k, (1, n), minval=-bound, maxval=bound,
                                  dtype=jnp.float32)

    w1 = xavier_normal(k1, dim_in, hidden)
    b1 = bias_uniform(k2, dim_in, hidden)
    w2 = xavier_normal(k3, hidden, dim_out)
    b2 = bias_uniform(k4, hidden, dim_out)
    return w1, b1, w2, b2


if __name__ == "__main__":
    dim_in, dim_out = 32, 8
    batch = 4  # deliberately not a multiple of 8 to exercise the padding path

    key = jax.random.PRNGKey(0)
    kx, kp = jax.random.split(key)
    x = jax.random.normal(kx, (batch, dim_in), dtype=jnp.float32)
    w1, b1, w2, b2 = init_params(kp, dim_in, dim_out)

    out = mlp_price(x, w1, b1, w2, b2)
    jax.block_until_ready(out)

    # Reference check in plain JAX (same math as the PyTorch forward).
    h_ref = x @ w1 + b1
    h_ref = jnp.where(h_ref >= 0, h_ref, 0.01 * h_ref)
    ref = h_ref @ w2 + b2
    assert out.shape == (batch, dim_out)
    assert jnp.allclose(out, ref, atol=1e-5, rtol=1e-5)

    print("KERNEL_OK")
</pallas_src>

<mosaic_0001>
module attributes {stable_mosaic.version = 11 : i64} {
  func.func @mlp_price_kernel(%arg0: i32, %arg1: memref<8x32xf32, #tpu.memory_space<vmem>>, %arg2: memref<32x16xf32, #tpu.memory_space<vmem>>, %arg3: memref<1x16xf32, #tpu.memory_space<vmem>>, %arg4: memref<16x128xf32, #tpu.memory_space<vmem>>, %arg5: memref<1x128xf32, #tpu.memory_space<vmem>>, %arg6: memref<8x128xf32, #tpu.memory_space<vmem>>) attributes {dimension_semantics = [#tpu.dimension_semantics<parallel>], iteration_bounds = array<i64: 1>, scalar_prefetch = 0 : i64, scratch_operands = 0 : i64, tpu.core_type = #tpu.core_type<tc>, window_params = [{transform_indices = @transform_0, window_bounds = array<i64: 8, 32>}, {pipeline_mode = #tpu.pipeline_mode<synchronous>, transform_indices = @transform_1, window_bounds = array<i64: 32, 16>}, {pipeline_mode = #tpu.pipeline_mode<synchronous>, transform_indices = @transform_2, window_bounds = array<i64: 1, 16>}, {pipeline_mode = #tpu.pipeline_mode<synchronous>, transform_indices = @transform_3, window_bounds = array<i64: 16, 128>}, {pipeline_mode = #tpu.pipeline_mode<synchronous>, transform_indices = @transform_4, window_bounds = array<i64: 1, 128>}, {transform_indices = @transform_5, window_bounds = array<i64: 8, 128>}]} {
    %c0 = arith.constant 0 : index
    %c0_0 = arith.constant 0 : index
    %0 = vector.load %arg1[%c0, %c0_0] : memref<8x32xf32, #tpu.memory_space<vmem>>, vector<8x32xf32>
    %c0_1 = arith.constant 0 : index
    %c0_2 = arith.constant 0 : index
    %1 = vector.load %arg2[%c0_1, %c0_2] : memref<32x16xf32, #tpu.memory_space<vmem>>, vector<32x16xf32>
    %cst = arith.constant dense<0.000000e+00> : vector<8x16xf32>
    %2 = tpu.matmul %0, %1, %cst {dimension_numbers = #tpu.dot_dimension_numbers<[1], [0], [0], [1], [0, 0, 1, 1], [], []>} : vector<8x32xf32>, vector<32x16xf32>, vector<8x16xf32> -> vector<8x16xf32>
    %c0_3 = arith.constant 0 : index
    %c0_4 = arith.constant 0 : index
    %3 = vector.load %arg3[%c0_3, %c0_4] : memref<1x16xf32, #tpu.memory_space<vmem>>, vector<1x16xf32>
    %4 = vector.broadcast %3 : vector<1x16xf32> to vector<8x16xf32>
    %5 = arith.addf %2, %4 : vector<8x16xf32>
    %cst_5 = arith.constant 0.00999999977 : f32
    %6 = vector.broadcast %cst_5 : f32 to vector<8x16xf32>
    %7 = arith.mulf %6, %5 : vector<8x16xf32>
    %8 = arith.maximumf %5, %7 : vector<8x16xf32>
    %c0_6 = arith.constant 0 : index
    %c0_7 = arith.constant 0 : index
    %9 = vector.load %arg4[%c0_6, %c0_7] : memref<16x128xf32, #tpu.memory_space<vmem>>, vector<16x128xf32>
    %cst_8 = arith.constant dense<0.000000e+00> : vector<8x128xf32>
    %10 = tpu.matmul %8, %9, %cst_8 {dimension_numbers = #tpu.dot_dimension_numbers<[1], [0], [0], [1], [0, 0, 1, 1], [], []>} : vector<8x16xf32>, vector<16x128xf32>, vector<8x128xf32> -> vector<8x128xf32>
    %c0_9 = arith.constant 0 : index
    %c0_10 = arith.constant 0 : index
    %11 = vector.load %arg5[%c0_9, %c0_10] : memref<1x128xf32, #tpu.memory_space<vmem>>, vector<1x128xf32>
    %12 = vector.broadcast %11 : vector<1x128xf32> to vector<8x128xf32>
    %13 = arith.addf %10, %12 : vector<8x128xf32>
    %c0_11 = arith.constant 0 : index
    %c0_12 = arith.constant 0 : index
    %14 = vector.load %arg6[%c0_11, %c0_12] : memref<8x128xf32, #tpu.memory_space<vmem>>, vector<8x128xf32>
    tpu.vector_store %arg6[%c0_11, %c0_12], %13 {strides = array<i32>} : memref<8x128xf32, #tpu.memory_space<vmem>>, vector<8x128xf32>,
    return
  }
  func.func @transform_0(%arg0: i32) -> (i32, i32) {
    %c0_i32 = arith.constant 0 : i32
    %c0_i32_0 = arith.constant 0 : i32
    return %arg0, %c0_i32 : i32, i32
  }
  func.func @transform_1(%arg0: i32) -> (i32, i32) {
    %c0_i32 = arith.constant 0 : i32
    %c0_i32_0 = arith.constant 0 : i32
    %c0_i32_1 = arith.constant 0 : i32
    return %c0_i32, %c0_i32_0 : i32, i32
  }
  func.func @transform_2(%arg0: i32) -> (i32, i32) {
    %c0_i32 = arith.constant 0 : i32
    %c0_i32_0 = arith.constant 0 : i32
    %c0_i32_1 = arith.constant 0 : i32
    return %c0_i32, %c0_i32_0 : i32, i32
  }
  func.func @transform_3(%arg0: i32) -> (i32, i32) {
    %c0_i32 = arith.constant 0 : i32
    %c0_i32_0 = arith.constant 0 : i32
    %c0_i32_1 = arith.constant 0 : i32
    return %c0_i32, %c0_i32_0 : i32, i32
  }
  func.func @transform_4(%arg0: i32) -> (i32, i32) {
    %c0_i32 = arith.constant 0 : i32
    %c0_i32_0 = arith.constant 0 : i32
    %c0_i32_1 = arith.constant 0 : i32
    return %c0_i32, %c0_i32_0 : i32, i32
  }
  func.func @transform_5(%arg0: i32) -> (i32, i32) {
    %c0_i32 = arith.constant 0 : i32
    %c0_i32_0 = arith.constant 0 : i32
    return %arg0, %c0_i32 : i32, i32
  }
}

</mosaic_0001>

<bundles_post_ra>
// kernel: tpu_custom_call.1
= control target key start
LH: loop header
LB: loop body
LE: loop exit
PB: predicated region body
PF: predicated region fallthrough
CT: control target
= control target key end

     0   :  { %s195_s0 = inlined_call_operand.vmem [shape: f32[8,32], index: 0, kind: input, shape index: {}]   ;;  %s196_s1 = inlined_call_operand.vmem [shape: f32[32,16], index: 1, kind: input, shape index: {}]   ;;  %s197_s2 = inlined_call_operand.vmem [shape: f32[1,16], index: 2, kind: input, shape index: {}]   ;;  %s198_s3 = inlined_call_operand.vmem [shape: f32[16,128], index: 3, kind: input, shape index: {}]   ;;  %s199_s4 = inlined_call_operand.vmem [shape: f32[1,128], index: 4, kind: input, shape index: {}]   ;;  %s200_s5 = inlined_call_operand.hbm [shape: f32[8,128], index: 5, kind: output, shape index: {}]  }
   0x1   :  { %v25_v0 = vld [vmem:[%s196_s1 + $0x18] sm:$0xff]  ;;  %v24_v1 = vld [vmem:[%s196_s1 + $0x10] sm:$0xff]  ;;  %v23_v2 = vld [vmem:[%s196_s1 + $0x8] sm:$0xff] }
   0x2   :  { %46 = vmatpush.msra.mxu0 %v25_v0 }
   0x3   :  { %10 = vsyncpa [#allocation3], 0  ;;  %v22_v3 = vld [vmem:[%s196_s1] sm:$0xff]  ;;  %vm30_vm0 = vcmask 261120   ;;  %v57_v5 = vld [vmem:[%s198_s3 + $0x8] sm:$0xff]  ;;  %vm62_vm1 = vcmask 130048  }
   0x4   :  { %47 = vmatpush.msra.mxu0 %v24_v1  ;;  %v21_v4 = vld [vmem:[%s195_s0] sm:$0xff]  ;;  %80 = vmatpush.msra.mxu1 %v57_v5  ;;  %s134_s9 = smov [#allocation2]  }
   0x5   :  { %v56_v6 = vld [vmem:[%s198_s3] sm:$0xff]  ;;  %s92_s10 = sshll.u32 %s134_s9, 4  ;;  %s94_s3 = sshll.u32 %s200_s5, 4  ;;  %s93_s10 = int_to_ptr.vmem [resolvable:$true] %s92_s10  ;;  %s95_s3 = int_to_ptr.hbm [resolvable:$true] %s94_s3 }
   0x6   :  { %48 = vmatpush.msra.mxu0 %v23_v2  ;;  %81 = vmatpush.msra.mxu1 %v56_v6  ;;  %v106_v7 = vld [vmem:[%s197_s2] ss:$0 sm:$0xff] }
   0x7   :  { %v107_v12 = vld [vmem:[%s199_s4] ss:$0 sm:$0xff] }
   0x8   :  { %49 = vmatpush.msra.mxu0 %v22_v3 }
   0x9   :  { %103 = vmatmul.msk.f32.vlgmr.msra.gmra.mxu0 %vm30_vm0, %v21_v4 }
  0x86   :  { %v51_v8 = vpop.f32.mrf.mxu0 }
  0x87   :  { %v52_v9 = vadd.f32 %v106_v7, %v51_v8 }
  0x89   :  { %v54_v10 = vmul.f32 0.01, %v52_v9 }
  0x8b   :  { %v55_v11 = vmax.f32 %v52_v9, %v54_v10 }
  0x8d   :  { %104 = vmatmul.msk.f32.vlgmr.msra.gmra.mxu1 %vm62_vm1, %v55_v11 }
 0x10a   :  { %v83_v13 = vpop.f32.mrf.mxu1 }
 0x10b   :  { %v84_v14 = vadd.f32 %v107_v12, %v83_v13 }
 0x10d   :  { %86 = vst [vmem:[#allocation2] sm:$0xff] %v84_v14 }
 0x10e   :  { %97 = dma.vmem_to_hbm [thread:$0]  %s93_s10, 128, %s95_s3, [#allocation3]  }
 0x10f   :  { %132 = dma.done.wait [#allocation3], 128  }
 0x110   :  { %133 = vsyncadd [#allocation3], 4294967168 }
 0x111   :  { %102 = vsyncpa [#allocation3], 1 }

</bundles_post_ra>
